<compile_context>
chip_gen: v6e
topology: v6e:2x2x1
jax: 0.10.0
libtpu: 0.0.40
codegen_flags: <defaults>
</compile_context>

<pallas_src>
import jax
import jax.numpy as jnp
from jax.experimental import pallas as pl
from jax.experimental.pallas import tpu as pltpu

BN_EPS = 1e-5


def dense_block_kernel(x_ref, w_ref, gb_ref, o_ref, acc_ref):
    # x: (B, bFin) pre-centered over the batch; w: (bFin, bFout);
    # gb: (2, bFout) f32 = [gamma; beta]; o: (B, bFout); acc: (B, bFout) f32 scratch.
    k = pl.program_id(1)

    @pl.when(k == 0)
    def _():
        acc_ref[...] = jnp.zeros_like(acc_ref)

    # diff = y - mean(y) straight out of the MXU (f32 accumulation); the Linear bias
    # is cancelled by the batch-mean subtraction and never touched.
    acc_ref[...] += jnp.dot(x_ref[...], w_ref[...], preferred_element_type=jnp.float32)

    @pl.when(k == pl.num_programs(1) - 1)
    def _():
        diff = acc_ref[...]
        inv_b = 1.0 / diff.shape[0]
        # Biased (training-mode) per-feature variance.
        var = jnp.sum(diff * diff, axis=0, keepdims=True) * inv_b
        gb = gb_ref[...]
        # gamma folded into rsqrt on the (1, bFout) row; rsqrt runs on the EUP slot.
        scale = gb[0:1, :] * jax.lax.rsqrt(var + BN_EPS)
        beta = gb[1:2, :]
        o_ref[...] = jnp.maximum(diff * scale + beta, 0.0).astype(o_ref.dtype)


def _vmem_limit_bytes():
    """Generation-aware VMEM limit: ~85% of physical per-core VMEM."""
    try:
        cap = getattr(pltpu.get_tpu_info(), "vmem_capacity_bytes", None)
        if cap:
            return int(0.85 * cap)
    except Exception:  # pragma: no cover - conservative fallback off-TPU / old runtimes
        pass
    return 64 * 1024 * 1024


def _divisor_tiles(n, unit):
    """Multiples of `unit` that divide n, descending; [n] if n is not a multiple of unit."""
    if n % unit != 0:
        return [n]
    return [c for c in range(n, 0, -unit) if n % c == 0]


def _choose_tiles(B, Fin, Fout, x_dsize, w_dsize, out_dsize, budget):
    fout_cands = _divisor_tiles(Fout, 128)  # lane-dense output tiles, descending
    fin_cands = _divisor_tiles(Fin, 128)    # K slabs, descending (prefer no K tiling)

    def cost(bfin, bfout):
        return (2 * bfin * bfout * w_dsize      # W tile, double-buffered
                + 2 * B * bfin * x_dsize        # x slab, double-buffered
                + 2 * B * bfout * out_dsize     # out tile, double-buffered
                + 2 * (2 * bfout) * 4           # gamma/beta (f32), double-buffered
                + B * bfout * 4)                # f32 accumulator scratch

    chosen = None
    for bfout in fout_cands:                    # biggest lane-dense output tile first
        for bfin in fin_cands:                  # bfin = Fin first -> single K step if it fits
            if cost(bfin, bfout) <= budget:
                chosen = (bfout, bfin)
                break
        if chosen is not None:
            break
    if chosen is None:                          # pathological shapes: best effort, smallest tiles
        chosen = (fout_cands[-1], fin_cands[-1])
    bfout, bfin = chosen

    # v7x: the Fout axis is the "parallel" one — prefer >=2 tiles so both TensorCores get
    # work, but only if the smaller tile is still >=512 lanes (512-wide output tiles
    # already sit near the HBM roofline; don't shrink below that).
    if bfout == Fout:
        for cand in fout_cands:
            if cand < Fout and cand >= 512 and cost(bfin, cand) <= budget:
                bfout = cand
                break
    return bfout, bfin


def dense_block(x, w, b, gamma, beta, *, mxu_dtype=jnp.bfloat16,
                block_fout=None, block_fin=None):
    """x: (B, Fin); w: (Fin, Fout) (nn.Linear weight transposed); b/gamma/beta: (Fout,).

    `b` (the nn.Linear bias) is accepted for parameter parity but is mathematically
    redundant under training-mode BatchNorm (cancelled by the batch-mean subtraction).
    TODO(synk): if BatchNorm1d running_mean/running_var buffer updates are ever added,
    the bias must be re-added to the running_mean accumulation (running stats are of
    y = xW + b, not of the centered diff).
    """
    del b  # dead under training-mode BN
    B, Fin = x.shape
    Fout = w.shape[1]
    out_dtype = x.dtype

    # Hoist the batch centering out of the kernel (previously recomputed per Fout tile).
    # Mean/subtract in f32 for precision, then cast once to the MXU feed dtype.
    xf = x.astype(jnp.float32)
    xc = (xf - jnp.mean(xf, axis=0, keepdims=True)).astype(mxu_dtype)
    # Store/stream W in the MXU feed dtype (bf16 by default): halves the dominant DMA bytes.
    wq = w.astype(mxu_dtype)
    # gamma/beta packed into one (2, Fout) slab -> single DMA; kept f32 (v5e-safe epilogue).
    gb = jnp.stack([gamma, beta], axis=0).astype(jnp.float32)

    vmem_limit = _vmem_limit_bytes()
    tile_budget = int(0.8 * vmem_limit)
    x_dsize = jnp.dtype(mxu_dtype).itemsize
    w_dsize = jnp.dtype(mxu_dtype).itemsize
    out_dsize = jnp.dtype(out_dtype).itemsize

    auto_fout, auto_fin = _choose_tiles(B, Fin, Fout, x_dsize, w_dsize, out_dsize,
                                        tile_budget)
    if block_fout is None:
        block_fout = auto_fout
    if block_fin is None:
        block_fin = auto_fin
    assert Fout % block_fout == 0 and Fin % block_fin == 0, "tiles must divide (Fout, Fin)"

    grid = (Fout // block_fout, Fin // block_fin)  # (parallel Fout tiles, K reduction slabs)

    return pl.pallas_call(
        dense_block_kernel,
        out_shape=jax.ShapeDtypeStruct((B, Fout), out_dtype),
        grid_spec=pltpu.PrefetchScalarGridSpec(
            num_scalar_prefetch=0,
            grid=grid,
            in_specs=[
                pl.BlockSpec((B, block_fin), lambda j, k: (0, k)),          # centered x slab
                pl.BlockSpec((block_fin, block_fout), lambda j, k: (k, j)),  # W tile
                pl.BlockSpec((2, block_fout), lambda j, k: (0, j)),          # [gamma; beta]
            ],
            out_specs=pl.BlockSpec((B, block_fout), lambda j, k: (0, j)),
            scratch_shapes=[pltpu.VMEM((B, block_fout), jnp.float32)],       # f32 accumulator
        ),
        compiler_params=pltpu.CompilerParams(
            # Fout tiles independent -> parallel (shards across v7x's two TCs);
            # Fin is a reduction into the scratch accumulator -> arbitrary, innermost.
            dimension_semantics=("parallel", "arbitrary"),
            vmem_limit_bytes=vmem_limit,
        ),
    )(xc, wq, gb)


def reference(x, w, b, gamma, beta):
    # Faithful PyTorch forward: Linear (with bias) -> training-mode BN -> ReLU, in f32.
    y = x @ w + b
    mean = jnp.mean(y, axis=0, keepdims=True)
    var = jnp.mean((y - mean) ** 2, axis=0, keepdims=True)
    y_hat = (y - mean) / jnp.sqrt(var + BN_EPS)
    return jnp.maximum(y_hat * gamma + beta, 0.0)


if __name__ == "__main__":
    key = jax.random.PRNGKey(0)
    B, IN_F, OUT_F = 8, 32, 128

    kx, kw, kb, kg, kbeta = jax.random.split(key, 5)
    x = jax.random.normal(kx, (B, IN_F), dtype=jnp.float32)

    # nn.Linear init: weight (out, in), bias (out); stored transposed (in, out) for the kernel.
    bound = 1.0 / (IN_F ** 0.5)
    w_t = jax.random.uniform(kw, (IN_F, OUT_F), minval=-bound, maxval=bound,
                             dtype=jnp.float32)
    b = jax.random.uniform(kb, (OUT_F,), minval=-bound, maxval=bound, dtype=jnp.float32)

    # BatchNorm1d affine params (defaults are 1/0; perturbed here to exercise the epilogue).
    gamma = 1.0 + 0.1 * jax.random.normal(kg, (OUT_F,), dtype=jnp.float32)
    beta = 0.1 * jax.random.normal(kbeta, (OUT_F,), dtype=jnp.float32)

    ref = reference(x, w_t, b, gamma, beta)

    # Default path: bf16 MXU operands (halves W DMA bytes in the HBM-bound regime).
    out = dense_block(x, w_t, b, gamma, beta)
    jax.block_until_ready(out)
    assert out.shape == (B, OUT_F)
    assert jnp.max(jnp.abs(out.astype(jnp.float32) - ref)) < 7.5e-2

    # Strict-precision path: f32 MXU operands.
    out_f32 = dense_block(x, w_t, b, gamma, beta, mxu_dtype=jnp.float32)
    jax.block_until_ready(out_f32)
    assert jnp.max(jnp.abs(out_f32 - ref)) < 1e-4

    print("KERNEL_OK")
</pallas_src>

<mosaic_0001>
module attributes {stable_mosaic.version = 11 : i64} {
  func.func @dense_block_kernel(%arg0: i32, %arg1: i32, %arg2: memref<8x32xbf16, #tpu.memory_space<vmem>>, %arg3: memref<32x128xbf16, #tpu.memory_space<vmem>>, %arg4: memref<2x128xf32, #tpu.memory_space<vmem>>, %arg5: memref<8x128xf32, #tpu.memory_space<vmem>>, %arg6: memref<8x128xf32, #tpu.memory_space<vmem>>) attributes {dimension_semantics = [#tpu.dimension_semantics<parallel>, #tpu.dimension_semantics<arbitrary>], iteration_bounds = array<i64: 1, 1>, scalar_prefetch = 0 : i64, scratch_operands = 1 : i64, tpu.core_type = #tpu.core_type<tc>, window_params = [{transform_indices = @transform_0, window_bounds = array<i64: 8, 32>}, {transform_indices = @transform_1, window_bounds = array<i64: 32, 128>}, {transform_indices = @transform_2, window_bounds = array<i64: 2, 128>}, {transform_indices = @transform_3, window_bounds = array<i64: 8, 128>}]} {
    %c0_i32 = arith.constant 0 : i32
    %0 = arith.cmpi eq, %arg1, %c0_i32 : i32
    %1 = arith.extui %0 : i1 to i32
    %c0_i32_0 = arith.constant 0 : i32
    %2 = arith.cmpi ne, %1, %c0_i32_0 : i32
    scf.if %2 {
      %cst_10 = arith.constant 0.000000e+00 : f32
      %12 = vector.broadcast %cst_10 : f32 to vector<8x128xf32>
      %c0_11 = arith.constant 0 : index
      %c0_12 = arith.constant 0 : index
      %13 = vector.load %arg6[%c0_11, %c0_12] : memref<8x128xf32, #tpu.memory_space<vmem>>, vector<8x128xf32>
      tpu.vector_store %arg6[%c0_11, %c0_12], %12 {strides = array<i32>} : memref<8x128xf32, #tpu.memory_space<vmem>>, vector<8x128xf32>,
    } else {
    }
    %c0 = arith.constant 0 : index
    %c0_1 = arith.constant 0 : index
    %3 = vector.load %arg6[%c0, %c0_1] : memref<8x128xf32, #tpu.memory_space<vmem>>, vector<8x128xf32>
    %c0_2 = arith.constant 0 : index
    %c0_3 = arith.constant 0 : index
    %4 = vector.load %arg2[%c0_2, %c0_3] : memref<8x32xbf16, #tpu.memory_space<vmem>>, vector<8x32xbf16>
    %c0_4 = arith.constant 0 : index
    %c0_5 = arith.constant 0 : index
    %5 = vector.load %arg3[%c0_4, %c0_5] : memref<32x128xbf16, #tpu.memory_space<vmem>>, vector<32x128xbf16>
    %cst = arith.constant dense<0.000000e+00> : vector<8x128xf32>
    %6 = tpu.matmul %4, %5, %cst {dimension_numbers = #tpu.dot_dimension_numbers<[1], [0], [0], [1], [0, 0, 1, 1], [], []>} : vector<8x32xbf16>, vector<32x128xbf16>, vector<8x128xf32> -> vector<8x128xf32>
    %7 = arith.addf %3, %6 : vector<8x128xf32>
    %c0_6 = arith.constant 0 : index
    %c0_7 = arith.constant 0 : index
    %8 = vector.load %arg6[%c0_6, %c0_7] : memref<8x128xf32, #tpu.memory_space<vmem>>, vector<8x128xf32>
    tpu.vector_store %arg6[%c0_6, %c0_7], %7 {strides = array<i32>} : memref<8x128xf32, #tpu.memory_space<vmem>>, vector<8x128xf32>,
    %c0_i32_8 = arith.constant 0 : i32
    %9 = arith.cmpi eq, %arg1, %c0_i32_8 : i32
    %10 = arith.extui %9 : i1 to i32
    %c0_i32_9 = arith.constant 0 : i32
    %11 = arith.cmpi ne, %10, %c0_i32_9 : i32
    scf.if %11 {
      %c0_10 = arith.constant 0 : index
      %c0_11 = arith.constant 0 : index
      %12 = vector.load %arg6[%c0_10, %c0_11] : memref<8x128xf32, #tpu.memory_space<vmem>>, vector<8x128xf32>
      %13 = arith.mulf %12, %12 : vector<8x128xf32>
      %cst_12 = arith.constant dense<0.000000e+00> : vector<128xf32>
      %14 = vector.multi_reduction <add>, %13, %cst_12 [0] : vector<8x128xf32> to vector<128xf32>
      %15 = vector.shape_cast %14 : vector<128xf32> to vector<1x128xf32>
      %cst_13 = arith.constant 1.250000e-01 : f32
      %16 = vector.broadcast %cst_13 : f32 to vector<1x128xf32>
      %17 = arith.mulf %15, %16 : vector<1x128xf32>
      %c0_14 = arith.constant 0 : index
      %c0_15 = arith.constant 0 : index
      %18 = vector.load %arg4[%c0_14, %c0_15] : memref<2x128xf32, #tpu.memory_space<vmem>>, vector<2x128xf32>
      %19 = vector.extract_strided_slice %18 {offsets = [0, 0], sizes = [1, 128], strides = [1, 1]} : vector<2x128xf32> to vector<1x128xf32>
      %cst_16 = arith.constant 9.99999974E-6 : f32
      %20 = vector.broadcast %cst_16 : f32 to vector<1x128xf32>
      %21 = arith.addf %17, %20 : vector<1x128xf32>
      %22 = math.rsqrt %21 : vector<1x128xf32>
      %23 = arith.mulf %19, %22 : vector<1x128xf32>
      %24 = vector.extract_strided_slice %18 {offsets = [1, 0], sizes = [1, 128], strides = [1, 1]} : vector<2x128xf32> to vector<1x128xf32>
      %25 = vector.broadcast %23 : vector<1x128xf32> to vector<8x128xf32>
      %26 = arith.mulf %12, %25 : vector<8x128xf32>
      %27 = vector.broadcast %24 : vector<1x128xf32> to vector<8x128xf32>
      %28 = arith.addf %26, %27 : vector<8x128xf32>
      %cst_17 = arith.constant 0.000000e+00 : f32
      %29 = vector.broadcast %cst_17 : f32 to vector<8x128xf32>
      %30 = arith.maximumf %28, %29 : vector<8x128xf32>
      %c0_18 = arith.constant 0 : index
      %c0_19 = arith.constant 0 : index
      %31 = vector.load %arg5[%c0_18, %c0_19] : memref<8x128xf32, #tpu.memory_space<vmem>>, vector<8x128xf32>
      tpu.vector_store %arg5[%c0_18, %c0_19], %30 {strides = array<i32>} : memref<8x128xf32, #tpu.memory_space<vmem>>, vector<8x128xf32>,
    } else {
    }
    return
  }
  func.func @transform_0(%arg0: i32, %arg1: i32) -> (i32, i32) {
    %c0_i32 = arith.constant 0 : i32
    %c0_i32_0 = arith.constant 0 : i32
    return %c0_i32, %arg1 : i32, i32
  }
  func.func @transform_1(%arg0: i32, %arg1: i32) -> (i32, i32) {
    %c0_i32 = arith.constant 0 : i32
    return %arg1, %arg0 : i32, i32
  }
  func.func @transform_2(%arg0: i32, %arg1: i32) -> (i32, i32) {
    %c0_i32 = arith.constant 0 : i32
    %c0_i32_0 = arith.constant 0 : i32
    return %c0_i32, %arg0 : i32, i32
  }
  func.func @transform_3(%arg0: i32, %arg1: i32) -> (i32, i32) {
    %c0_i32 = arith.constant 0 : i32
    %c0_i32_0 = arith.constant 0 : i32
    return %c0_i32, %arg0 : i32, i32
  }
}

</mosaic_0001>

<bundles_post_ra>
// kernel: tpu_custom_call.1
= control target key start
LH: loop header
LB: loop body
LE: loop exit
PB: predicated region body
PF: predicated region fallthrough
CT: control target
= control target key end

     0   :  { %8 = vsyncpa [#allocation4], 0  ;;  %s285_s0 = inlined_call_operand.hbm [shape: bf16[8,32], index: 0, kind: input, shape index: {}]   ;;  %s286_s1 = inlined_call_operand.hbm [shape: bf16[32,128], index: 1, kind: input, shape index: {}]   ;;  %s287_s2 = inlined_call_operand.vmem [shape: f32[2,128], index: 2, kind: input, shape index: {}]   ;;  %s288_s3 = inlined_call_operand.hbm [shape: f32[8,128], index: 3, kind: output, shape index: {}]  }
   0x1   :  { %9 = vsyncpa [#allocation7], 0 }
   0x2   :  { %10 = vsyncpa [#allocation5], 0  ;;  %s246_s12 = smov [#allocation3]   ;;  %s247_s14 = smov [#allocation6]  }
   0x3   :  { %s17_s13 = sshll.u32 %s246_s12, 4  ;;  %s26_s15 = sshll.u32 %s247_s14, 4  ;;  %s18_s13 = int_to_ptr.vmem [resolvable:$true] %s17_s13  ;;  %s27_s15 = int_to_ptr.vmem [resolvable:$true] %s26_s15 }
   0x4   :  { %s188_s16 = scalar_lea.vmem %s18_s13, 64  ;;  %p193_p1 = scmp.lt.s32.totalorder %s18_s13, %s18_s13 }
   0x5   :  { %p189_p0 = scmp.ne.s32.totalorder %s18_s13, %s188_s16  ;;  %p194_p2 = scmp.lt.s32.totalorder %s188_s16, %s188_s16 }
   0x7   :  { %p195_p3 = por %p194_p2, %p193_p1 }
   0x9   :  { %p196_p4 = pnand %p195_p3, %p189_p0 }
   0xb   :  { %199 = shalt.err (!%p196_p4)
}
   0xc   :  { %20 = dma.hbm_to_vmem [thread:$0]  %s285_s0, 64, %s18_s13, [#allocation4]  }
   0xd   :  { %s208_s19 = scalar_lea.vmem %s27_s15, 256  ;;  %p213_p6 = scmp.lt.s32.totalorder %s27_s15, %s27_s15 }
   0xe   :  { %p209_p5 = scmp.ne.s32.totalorder %s27_s15, %s208_s19  ;;  %p214_p7 = scmp.lt.s32.totalorder %s208_s19, %s208_s19 }
  0x10   :  { %p215_p8 = por %p214_p7, %p213_p6 }
  0x12   :  { %p216_p9 = pnand %p215_p8, %p209_p5 }
  0x14   :  { %219 = shalt.err (!%p216_p9)
}
  0x15   :  { %s248_s20 = smov 64   ;;  %s249_s21 = smov 4  }
  0x16   :  { %32 = dma.hbm_to_vmem [thread:$0]  %s286_s1, 256, %s27_s15, [#allocation7], %s248_s20, %s248_s20, %s249_s21  }
  0x17   :  { %240 = dma.done.wait [#allocation4], 64  }
  0x18   :  { %241 = vsyncadd [#allocation4], 4294967232 }
  0x19   :  { %242 = dma.done.wait [#allocation7], 256  }
  0x1a   :  { %243 = vsyncadd [#allocation7], 4294967040  ;;  %v250_v0 = vmov 0.0   ;;  %vm251_vm0 = vmmov 0   ;;  %v176_v1 = vld [vmem:[#allocation6 + $0x8] sm:$0xff]   ;;  %v177_v2 = vld [vmem:[#allocation6] sm:$0xff]   ;;  %v127_v17 = vlaneseq }
  0x1b   :  { %161 = vmatprep.subr.bf16.mxu0 %v250_v0  ;;  %165 = vmatprep.mubr.msk.bf16.mxu0 %vm251_vm0, %v250_v0  ;;  %v48_v3 = vld [vmem:[#allocation3] sm:$0xf]  ;;  %vm65_vm1 = vcmask 261120   ;;  %s252_s24 = smov [#allocation8]  }
  0x1c   :  { %162 = vmatpush3.bf16.msra.mxu0 %v176_v1  ;;  %v128_v18 = vshrl.u32 %v127_v17, 7  ;;  %v123_v19 = vld [vmem:[%s287_s2] sm:$0x3]  ;;  %s145_s25 = sshll.u32 %s252_s24, 4  ;;  %s146_s25 = int_to_ptr.vmem [resolvable:$true] %s145_s25 }
  0x1d   :  { %163 = vmatprep.subr.bf16.mxu0 %v250_v0  ;;  %s220_s26 = scalar_lea.vmem %s146_s25, 128  ;;  %p225_p11 = scmp.lt.s32.totalorder %s146_s25, %s146_s25 }
  0x1e   :  { %v129_v20 = vsub.s32 0, %v128_v18  ;;  %v134_v21 = vsub.s32 1, %v128_v18  ;;  %p221_p10 = scmp.ne.s32.totalorder %s146_s25, %s220_s26  ;;  %p226_p12 = scmp.lt.s32.totalorder %s220_s26, %s220_s26 }
  0x20   :  { %164 = vmatpush3.bf16.msra.mxu0 %v177_v2  ;;  %v135_v25 = vrot.slane %v123_v19, %v134_v21  ;;  %p227_p13 = por %p226_p12, %p225_p11 }
  0x22   :  { %p228_p0 = pnand %p227_p13, %p221_p10 }
  0x23   :  { %166 = vmatmul.mubr.msk.bf16.vlgmr.msra.gmra.mxu0 %vm65_vm1, %v48_v3 }
  0xe3   :  { %v103_v4 = vpop.f32.mrf.mxu0 }
  0xe4   :  { %v115_v5 = vmul.f32 %v103_v4, %v103_v4 }
  0xe5   :  { %v167_v6 = vpop.f32.mrf.mxu0 }
  0xe6   :  { %v116_v7 = vrot.slane %v115_v5, 4 }
  0xe7   :  { %v106_v8 = vpop.f32.mrf.mxu0 }
  0xe8   :  { %v117_v9 = vadd.f32 %v116_v7, %v115_v5 }
  0xe9   :  { %v168_v10 = vpop.f32.mrf.mxu0 }
  0xea   :  { %v118_v11 = vrot.slane %v117_v9, 2 }
  0xec   :  { %v119_v12 = vadd.f32 %v118_v11, %v117_v9 }
  0xee   :  { %v120_v13 = vrot.slane %v119_v12, 1 }
  0xf0   :  { %v121_v14 = vadd.f32 %v120_v13, %v119_v12 }
  0xf2   :  { %v122_v15 = vmul.f32 0.125, %v121_v14 }
  0xf4   :  { %v124_v16 = vadd.f32 1e-05, %v122_v15 }
  0xf6   :  { %178 = vrsqrt.f32 %v124_v16 }
 0x103   :  { %v179_v22 = vpop.eup %178 }
 0x104   :  { %v126_v23 = vmul.f32 %v179_v22, %v123_v19 }
 0x106   :  { %v130_v24 = vrot.slane %v126_v23, %v129_v20 }
 0x108   :  { %v131_v26 = vmul.f32 %v130_v24, %v103_v4 }
 0x10a   :  { %v136_v27 = vadd.f32 %v135_v25, %v131_v26 }
 0x10c   :  { %v137_v28 = vmax.f32 %v136_v27, 0.0 }
 0x10e   :  { %138 = vst [vmem:[#allocation8] sm:$0xff] %v137_v28 }
 0x10f   :  { %231 = shalt.err (!%p228_p0)
}
 0x110   :  { %148 = dma.vmem_to_hbm [thread:$0]  %s146_s25, 128, %s288_s3, [#allocation5]  }
 0x111   :  { %244 = dma.done.wait [#allocation5], 128  }
 0x112   :  { %245 = vsyncadd [#allocation5], 4294967168 }
 0x113   :  { %152 = vsyncpa [#allocation4], 1 }
 0x114   :  { %153 = vsyncpa [#allocation7], 1 }
 0x115   :  { %154 = vsyncpa [#allocation5], 1 }

</bundles_post_ra>
